<compile_context>
chip_gen: v7x
topology: tpu7x:2x2x1
jax: 0.10.0
libtpu: 0.0.40
codegen_flags: <defaults>
</compile_context>

<pallas_src>
import jax
import jax.numpy as jnp
from jax.experimental import pallas as pl
from jax.experimental.pallas import tpu as pltpu


def stu_fused_kernel(xf_ref, w_ref, of_ref):
    """One MXU GEMM: out_flat = x_flat @ W.

    xf_ref: (Bb, L*D)   bf16  rows = batch elements, lanes = (s, i) flattened
    w_ref : (L*D, Nb)   bf16  fused spectral operator (column tile)
    of_ref: (Bb, Nb)    f32   output tile, lanes = (t, j) flattened (lane-dense)
    """
    of_ref[...] = jnp.dot(
        xf_ref[...], w_ref[...], preferred_element_type=jnp.float32
    ).astype(of_ref.dtype)


def _fused_operator(phi, M_phi_plus, M_phi_minus):
    """Precompute W[(s,i),(t,j)] = sum_k T+[k,t,s]*(M+[k,i,j] + (-1)^(t-s)*M-[k,i,j]).

    Parameter-only (independent of x): done once in plain JAX / f32 and reused
    for every forward call.  Like the PyTorch tensordot(dims=([2,3],[0,1])),
    x's feature axis contracts against M's d_out axis (valid since d_in==d_out).
    """
    L = phi.shape[0]
    t = jnp.arange(L)[:, None]
    s = jnp.arange(L)[None, :]
    diff = t - s
    causal = diff >= 0
    # T_plus[t, s, k] = phi[t-s, k] for t >= s else 0
    tp = jnp.where(causal[..., None], phi[jnp.clip(diff, 0, L - 1)], 0.0)
    alt = jnp.where((diff % 2) == 0, 1.0, -1.0)          # (-1)^(t-s)
    tm = tp * alt[..., None]                             # T_minus[t, s, k]
    W = (jnp.einsum("tsk,kij->sitj", tp, M_phi_plus)
         + jnp.einsum("tsk,kij->sitj", tm, M_phi_minus))  # (L, D, L, D)
    D = M_phi_plus.shape[1]
    return W.reshape(L * D, L * D)


def stu_forward(x, phi, M_phi_plus, M_phi_minus, *, block_b=128, block_n=2048):
    """STU forward: out[b,t,j] = sum_{s,i} x[b,s,i] * W[(s,i),(t,j)]."""
    B, L, D = x.shape
    # Module bakes in d_in == d_out (tensordot contracts features with d_out).
    assert M_phi_plus.shape[1] == M_phi_plus.shape[2] == D
    N = L * D

    W = _fused_operator(phi, M_phi_plus, M_phi_minus).astype(jnp.bfloat16)  # (N, N)
    xf = x.reshape(B, N).astype(jnp.bfloat16)                               # (B, N)

    # Tile sizes: collapse to one program at the shipped shapes (B=2, N=256);
    # tiles are (8,128)-legal (either full-extent or multiples of 8 / 128).
    bb = B if B <= block_b else block_b       # block_b is a multiple of 8
    bn = N if N <= block_n else block_n       # block_n is a multiple of 128
    grid = (pl.cdiv(B, bb), pl.cdiv(N, bn))   # == (1, 1) at the shipped config

    out_flat = pl.pallas_call(
        stu_fused_kernel,
        out_shape=jax.ShapeDtypeStruct((B, N), x.dtype),
        grid_spec=pltpu.PrefetchScalarGridSpec(
            num_scalar_prefetch=0,
            grid=grid,
            in_specs=[
                pl.BlockSpec((bb, N), lambda i, j: (i, 0)),   # x rows (full contraction)
                pl.BlockSpec((N, bn), lambda i, j: (0, j)),   # W column tile (resident over i)
            ],
            out_specs=pl.BlockSpec((bb, bn), lambda i, j: (i, j)),  # lane-dense (N mult. of 128)
        ),
        compiler_params=pltpu.CompilerParams(
            # Both axes independent -> shards across v7x's 2 TensorCores when
            # the problem is large enough to have >1 grid step.
            dimension_semantics=("parallel", "parallel"),
        ),
    )(xf, W)
    return out_flat.reshape(B, L, D)


def stu_reference(x, phi, M_phi_plus, M_phi_minus):
    """Pure-JAX (f32) reference of the same forward semantics."""
    B, L, D = x.shape
    t = jnp.arange(L)[:, None]
    s = jnp.arange(L)[None, :]
    diff = t - s
    causal = diff >= 0
    phi_gather = phi.T[:, jnp.clip(diff, 0, L - 1)]             # (K, L, L)
    T_plus = jnp.where(causal[None], phi_gather, 0.0)
    alt = jnp.where((diff % 2) == 0, 1.0, -1.0)
    T_minus = jnp.where(causal[None], phi_gather * alt[None], 0.0)
    U_plus = jnp.einsum("kts,bsd->btkd", T_plus, x)
    U_minus = jnp.einsum("kts,bsd->btkd", T_minus, x)
    return (jnp.einsum("btkm,kmj->btj", U_plus, M_phi_plus)
            + jnp.einsum("btkm,kmj->btj", U_minus, M_phi_minus))


if __name__ == "__main__":
    # Config-implied shapes (small): n_embd=32, num_eigh=4 -> K = num_eigh**2 = 16
    B, L = 2, 8
    n_embd = 32
    num_eigh = 4
    K = num_eigh ** 2

    key = jax.random.PRNGKey(0)
    k1, k2, k3, k4 = jax.random.split(key, 4)
    x = jax.random.normal(k1, (B, L, n_embd), dtype=jnp.float32)
    phi = jax.random.normal(k2, (L, K), dtype=jnp.float32) * 0.1
    M_phi_plus = jax.random.normal(k3, (K, n_embd, n_embd), dtype=jnp.float32) * 0.02
    M_phi_minus = jax.random.normal(k4, (K, n_embd, n_embd), dtype=jnp.float32) * 0.02

    out = stu_forward(x, phi, M_phi_plus, M_phi_minus)
    jax.block_until_ready(out)

    ref = stu_reference(x, phi, M_phi_plus, M_phi_minus)
    assert out.shape == (B, L, n_embd), out.shape
    # Tolerance accounts for the single bf16 operand cast (f32 MXU accumulation).
    err = float(jnp.max(jnp.abs(out - ref)))
    assert jnp.allclose(out, ref, rtol=2e-2, atol=2e-2), err
    print("KERNEL_OK")
</pallas_src>

<mosaic_0001>
module attributes {stable_mosaic.version = 11 : i64} {
  func.func @stu_fused_kernel(%arg0: i32, %arg1: i32, %arg2: memref<2x256xbf16, #tpu.memory_space<vmem>>, %arg3: memref<256x256xbf16, #tpu.memory_space<vmem>>, %arg4: memref<2x256xf32, #tpu.memory_space<vmem>>) attributes {dimension_semantics = [#tpu.dimension_semantics<parallel>, #tpu.dimension_semantics<parallel>], iteration_bounds = array<i64: 1, 1>, scalar_prefetch = 0 : i64, scratch_operands = 0 : i64, tpu.core_type = #tpu.core_type<tc>, window_params = [{transform_indices = @transform_0, window_bounds = array<i64: 2, 256>}, {transform_indices = @transform_1, window_bounds = array<i64: 256, 256>}, {transform_indices = @transform_2, window_bounds = array<i64: 2, 256>}]} {
    %c0 = arith.constant 0 : index
    %c0_0 = arith.constant 0 : index
    %0 = vector.load %arg2[%c0, %c0_0] : memref<2x256xbf16, #tpu.memory_space<vmem>>, vector<2x256xbf16>
    %c0_1 = arith.constant 0 : index
    %c0_2 = arith.constant 0 : index
    %1 = vector.load %arg3[%c0_1, %c0_2] : memref<256x256xbf16, #tpu.memory_space<vmem>>, vector<256x256xbf16>
    %cst = arith.constant dense<0.000000e+00> : vector<2x256xf32>
    %2 = tpu.matmul %0, %1, %cst {dimension_numbers = #tpu.dot_dimension_numbers<[1], [0], [0], [1], [0, 0, 1, 1], [], []>} : vector<2x256xbf16>, vector<256x256xbf16>, vector<2x256xf32> -> vector<2x256xf32>
    %c0_3 = arith.constant 0 : index
    %c0_4 = arith.constant 0 : index
    %3 = vector.load %arg4[%c0_3, %c0_4] : memref<2x256xf32, #tpu.memory_space<vmem>>, vector<2x256xf32>
    tpu.vector_store %arg4[%c0_3, %c0_4], %2 {strides = array<i32>} : memref<2x256xf32, #tpu.memory_space<vmem>>, vector<2x256xf32>,
    return
  }
  func.func @transform_0(%arg0: i32, %arg1: i32) -> (i32, i32) {
    %c0_i32 = arith.constant 0 : i32
    %c0_i32_0 = arith.constant 0 : i32
    return %arg0, %c0_i32 : i32, i32
  }
  func.func @transform_1(%arg0: i32, %arg1: i32) -> (i32, i32) {
    %c0_i32 = arith.constant 0 : i32
    %c0_i32_0 = arith.constant 0 : i32
    return %c0_i32, %arg1 : i32, i32
  }
  func.func @transform_2(%arg0: i32, %arg1: i32) -> (i32, i32) {
    %c0_i32 = arith.constant 0 : i32
    return %arg0, %arg1 : i32, i32
  }
}

</mosaic_0001>

<bundles_post_ra>
// kernel: tpu_custom_call.1
= control target key start
LH: loop header
LB: loop body
LE: loop exit
PB: predicated region body
PF: predicated region fallthrough
CT: control target
= control target key end

     0   :  { %7 = vsyncpa [#allocation3], 0  ;;  %s549_s0 = inlined_call_operand.hbm [shape: bf16[2,256], index: 0, kind: input, shape index: {}]   ;;  %s550_s1 = inlined_call_operand.hbm [shape: bf16[256,256], index: 1, kind: input, shape index: {}]   ;;  %s551_s2 = inlined_call_operand.hbm [shape: f32[2,256], index: 2, kind: output, shape index: {}]  }
   0x1   :  { %8 = vsyncpa [#allocation6], 0 }
   0x2   :  { %9 = vsyncpa [#allocation4], 0  ;;  %s485_s9 = smov [#allocation2]   ;;  %s486_s11 = smov [#allocation5]  }
   0x3   :  { %s16_s10 = sshll.u32 %s485_s9, 4  ;;  %s25_s12 = sshll.u32 %s486_s11, 4  ;;  %s17_s10 = int_to_ptr.vmem [resolvable:$true] %s16_s10  ;;  %s506_s12 = int_to_ptr.vmem [resolvable:$true] %s25_s12 }
   0x4   :  { %s413_s15 = scalar_lea.hbm %s549_s0, 32 }
   0x5   :  { %p414_p0 = scmp.ne.s32.totalorder %s549_s0, %s413_s15  ;;  %p417_p1 = scmp.lt.u32.totalorder %s413_s15, %s549_s0 }
   0x7   :  { %p419_p2 = pnand %p417_p1, %p414_p0 }
   0x9   :  { %422 = shalt.err (!%p419_p2)
}
   0xa   :  { %s423_s20 = scalar_lea.vmem %s17_s10, 32  ;;  %p428_p4 = scmp.lt.s32.totalorder %s17_s10, %s17_s10 }
   0xb   :  { %p424_p3 = scmp.ne.s32.totalorder %s17_s10, %s423_s20  ;;  %p429_p5 = scmp.lt.s32.totalorder %s423_s20, %s423_s20 }
   0xd   :  { %p430_p6 = por %p429_p5, %p428_p4 }
   0xf   :  { %p431_p7 = pnand %p430_p6, %p424_p3 }
  0x11   :  { %434 = shalt.err (!%p431_p7)
}
  0x12   :  { %19 = dma.hbm_to_vmem [thread:$0]  %s549_s0, 32, %s17_s10, [#allocation3]  }
  0x13   :  { %s435_s25 = scalar_lea.hbm %s550_s1, 4096 }
  0x14   :  { %p436_p8 = scmp.ne.s32.totalorder %s550_s1, %s435_s25  ;;  %p439_p9 = scmp.lt.u32.totalorder %s435_s25, %s550_s1 }
  0x16   :  { %p441_p10 = pnand %p439_p9, %p436_p8 }
  0x18   :  { %444 = shalt.err (!%p441_p10)
}
  0x19   :  { %s445_s30 = scalar_lea.vmem %s506_s12, 4096  ;;  %p450_p12 = scmp.lt.s32.totalorder %s506_s12, %s506_s12 }
  0x1a   :  { %p446_p11 = scmp.ne.s32.totalorder %s506_s12, %s445_s30  ;;  %p451_p13 = scmp.lt.s32.totalorder %s445_s30, %s445_s30 }
  0x1c   :  { %p452_p0 = por %p451_p13, %p450_p12 }
  0x1e   :  { %p453_p1 = pnand %p452_p0, %p446_p11 }
  0x20   :  { %456 = shalt.err (!%p453_p1)
}
  0x21   :  { %s487_s0 = smov 128   ;;  %s488_s3 = smov 8  }
  0x22   :  { %31 = dma.hbm_to_vmem [thread:$0]  %s550_s1, 4096, %s506_s12, [#allocation6], %s487_s0, %s487_s0, %s488_s3  }
  0x23   :  { %479 = dma.done.wait [#allocation3], 32  }
  0x24   :  { %480 = vsyncadd [#allocation3], 4294967264 }
  0x25   :  { %481 = dma.done.wait [#allocation6], 4096  }
  0x26   :  { %482 = vsyncadd [#allocation6], 4294963200  ;;  %v365_v0 = vld [vmem:[#allocation5 + $0x4] ss:$8 sps:$4 sm:$0xff]   ;;  %v367_v1 = vld [vmem:[#allocation5] ss:$8 sps:$4 sm:$0xff]   ;;  %v83_v11 = vlaneseq }
  0x27   :  { %256 = vmatprep.subr.bf16.mxu0 %v365_v0  ;;  %v368_v2 = vld [vmem:[#allocation5 + $0x14] ss:$8 sps:$4 sm:$0xff]   ;;  %v370_v3 = vld [vmem:[#allocation5 + $0x10] ss:$8 sps:$4 sm:$0xff]   ;;  %v371_v4 = vld [vmem:[#allocation5 + $0x24] ss:$8 sps:$4 sm:$0xff]  }
  0x28   :  { %257 = vmatpush1.bf16.msra.mxu0 %v367_v1  ;;  %v373_v5 = vld [vmem:[#allocation5 + $0x20] ss:$8 sps:$4 sm:$0xff]   ;;  %v374_v6 = vld [vmem:[#allocation5 + $0x34] ss:$8 sps:$4 sm:$0xff]   ;;  %v376_v7 = vld [vmem:[#allocation5 + $0x30] ss:$8 sps:$4 sm:$0xff]  }
  0x29   :  { %258 = vmatprep.subr.bf16.mxu0 %v368_v2  ;;  %v377_v8 = vld [vmem:[#allocation5 + $0x44] ss:$8 sps:$4 sm:$0xff]   ;;  %v489_v9 = vmov 1966171168   ;;  %v379_v12 = vld [vmem:[#allocation5 + $0x40] ss:$8 sps:$4 sm:$0xff]  }
  0x2a   :  { %v81_v10 = vunpack.c.l.s4 %v489_v9  ;;  %v380_v13 = vld [vmem:[#allocation5 + $0x54] ss:$8 sps:$4 sm:$0xff]   ;;  %v84_v15 = vshrl.u32 %v83_v11, 7  ;;  %v382_v16 = vld [vmem:[#allocation5 + $0x50] ss:$8 sps:$4 sm:$0xff]   ;;  %s490_s1 = smov [#allocation7]  }
  0x2b   :  { %v383_v17 = vld [vmem:[#allocation5 + $0x64] ss:$8 sps:$4 sm:$0xff]   ;;  %v325_v19 = vld.sshfl [vmem:[#allocation2] sm:$0x11 pattern:$0x75316420] }
  0x2c   :  { %259 = vmatpush1.bf16.msra.mxu0 %v370_v3  ;;  %v82_v14 = vunpack.c.0.s8 %v81_v10  ;;  %v79_v20 = vcombine.high %v325_v19, %v325_v19  ;;  %v385_v21 = vld [vmem:[#allocation5 + $0x60] ss:$8 sps:$4 sm:$0xff]   ;;  %v386_v22 = vld [vmem:[#allocation5 + $0x74] ss:$8 sps:$4 sm:$0xff]   ;;  %v388_v24 = vld [vmem:[#allocation5 + $0x70] ss:$8 sps:$4 sm:$0xff]  }
  0x2d   :  { %260 = vmatprep.subr.bf16.mxu0 %v371_v4  ;;  %v389_v25 = vld [vmem:[#allocation5 + $0x84] ss:$8 sps:$4 sm:$0xff]   ;;  %v391_v26 = vld [vmem:[#allocation5 + $0x80] ss:$8 sps:$4 sm:$0xff]   ;;  %v392_v27 = vld [vmem:[#allocation5 + $0x94] ss:$8 sps:$4 sm:$0xff]  }
  0x2e   :  { %v85_v18 = vsub.s32 %v82_v14, %v84_v15  ;;  %v394_v28 = vld [vmem:[#allocation5 + $0x90] ss:$8 sps:$4 sm:$0xff]   ;;  %v395_v29 = vld [vmem:[#allocation5 + $0xa4] ss:$8 sps:$4 sm:$0xff]   ;;  %v397_v30 = vld [vmem:[#allocation5 + $0xa0] ss:$8 sps:$4 sm:$0xff]  }
  0x2f   :  { %v398_v31 = vld [vmem:[#allocation5 + $0xb4] ss:$8 sps:$4 sm:$0xff]   ;;  %v400_v32 = vld [vmem:[#allocation5 + $0xb0] ss:$8 sps:$4 sm:$0xff]   ;;  %v401_v33 = vld [vmem:[#allocation5 + $0xc4] ss:$8 sps:$4 sm:$0xff]  }
  0x30   :  { %261 = vmatpush1.bf16.msra.mxu0 %v373_v5  ;;  %v93_v23 = vrot.slane %v79_v20, %v85_v18  ;;  %v403_v34 = vld [vmem:[#allocation5 + $0xc0] ss:$8 sps:$4 sm:$0xff]   ;;  %v404_v35 = vld [vmem:[#allocation5 + $0xd4] ss:$8 sps:$4 sm:$0xff]   ;;  %v406_v36 = vld [vmem:[#allocation5 + $0xd0] ss:$8 sps:$4 sm:$0xff]   ;;  %v86_v41 = vrot.slane %v325_v19, %v85_v18 }
  0x31   :  { %262 = vmatprep.subr.bf16.mxu0 %v374_v6  ;;  %v407_v37 = vld [vmem:[#allocation5 + $0xe4] ss:$8 sps:$4 sm:$0xff]   ;;  %v409_v38 = vld [vmem:[#allocation5 + $0xe0] ss:$8 sps:$4 sm:$0xff]   ;;  %v410_v39 = vld [vmem:[#allocation5 + $0xf4] ss:$8 sps:$4 sm:$0xff]  }
  0x32   :  { %288 = vmatprep.mubr.bf16.mxu0 %v93_v23  ;;  %v412_v40 = vld [vmem:[#allocation5 + $0xf0] ss:$8 sps:$4 sm:$0xff]   ;;  %s315_s6 = sshll.u32 %s490_s1, 4  ;;  %s316_s6 = int_to_ptr.vmem [resolvable:$true] %s315_s6 }
  0x33   :  { %s457_s7 = scalar_lea.vmem %s316_s6, 64  ;;  %p462_p3 = scmp.lt.s32.totalorder %s316_s6, %s316_s6 }
  0x34   :  { %263 = vmatpush1.bf16.msra.mxu0 %v376_v7  ;;  %p458_p2 = scmp.ne.s32.totalorder %s316_s6, %s457_s7  ;;  %p463_p4 = scmp.lt.s32.totalorder %s457_s7, %s457_s7 }
  0x35   :  { %264 = vmatprep.subr.bf16.mxu0 %v377_v8 }
  0x36   :  { %p464_p5 = por %p463_p4, %p462_p3 }
  0x38   :  { %265 = vmatpush1.bf16.msra.mxu0 %v379_v12  ;;  %p465_p6 = pnand %p464_p5, %p458_p2 }
  0x39   :  { %266 = vmatprep.subr.bf16.mxu0 %v380_v13 }
  0x3c   :  { %267 = vmatpush1.bf16.msra.mxu0 %v382_v16 }
  0x3d   :  { %268 = vmatprep.subr.bf16.mxu0 %v383_v17 }
  0x40   :  { %269 = vmatpush1.bf16.msra.mxu0 %v385_v21 }
  0x41   :  { %270 = vmatprep.subr.bf16.mxu0 %v386_v22 }
  0x44   :  { %271 = vmatpush1.bf16.msra.mxu0 %v388_v24 }
  0x45   :  { %272 = vmatprep.subr.bf16.mxu0 %v389_v25 }
  0x48   :  { %273 = vmatpush1.bf16.msra.mxu0 %v391_v26 }
  0x49   :  { %274 = vmatprep.subr.bf16.mxu0 %v392_v27 }
  0x4c   :  { %275 = vmatpush1.bf16.msra.mxu0 %v394_v28 }
  0x4d   :  { %276 = vmatprep.subr.bf16.mxu0 %v395_v29 }
  0x50   :  { %277 = vmatpush1.bf16.msra.mxu0 %v397_v30 }
  0x51   :  { %278 = vmatprep.subr.bf16.mxu0 %v398_v31 }
  0x54   :  { %279 = vmatpush1.bf16.msra.mxu0 %v400_v32 }
  0x55   :  { %280 = vmatprep.subr.bf16.mxu0 %v401_v33 }
  0x58   :  { %281 = vmatpush1.bf16.msra.mxu0 %v403_v34 }
  0x59   :  { %282 = vmatprep.subr.bf16.mxu0 %v404_v35 }
  0x5c   :  { %283 = vmatpush1.bf16.msra.mxu0 %v406_v36 }
  0x5d   :  { %284 = vmatprep.subr.bf16.mxu0 %v407_v37 }
  0x60   :  { %285 = vmatpush1.bf16.msra.mxu0 %v409_v38 }
  0x61   :  { %286 = vmatprep.subr.bf16.mxu0 %v410_v39 }
  0x64   :  { %287 = vmatpush1.bf16.msra.mxu0 %v412_v40 }
  0x67   :  { %289 = vmatmul.mubr.bf16.vlgmr.msra.gmra.mrb[0].mxu0 %v86_v41 }
 0x13a   :  { %v290_v42 = vpop.f32.mrb[0].mxu0 }
 0x13b   :  { %v292_v43 = vpop.f32.mrb[1].mxu0 }
 0x13c   :  { %v299_v44 = vcombine.low %v290_v42, %v292_v43  ;;  %v294_v45 = vpop.f32.mrb[2].mxu0 }
 0x13d   :  { %v295_v46 = vpop.f32.mrb[3].mxu0 }
 0x13e   :  { %358 = vst.sshfl [vmem:[#allocation7] sm:$0x33 pattern:$0x76325410] %v299_v44 }
 0x13f   :  { %468 = shalt.err (!%p465_p6)
}
 0x140   :  { %s469_s10 = scalar_lea.hbm %s551_s2, 64 }
 0x141   :  { %p470_p7 = scmp.ne.s32.totalorder %s551_s2, %s469_s10  ;;  %p473_p8 = scmp.lt.u32.totalorder %s469_s10, %s551_s2 }
 0x143   :  { %p475_p9 = pnand %p473_p8, %p470_p7 }
 0x145   :  { %478 = shalt.err (!%p475_p9)
}
 0x146   :  { %318 = dma.vmem_to_hbm [thread:$0]  %s316_s6, 64, %s551_s2, [#allocation4]  }
 0x147   :  { %483 = dma.done.wait [#allocation4], 64  }
 0x148   :  { %484 = vsyncadd [#allocation4], 4294967232 }
 0x149   :  { %322 = vsyncpa [#allocation3], 1 }
 0x14a   :  { %323 = vsyncpa [#allocation6], 1 }
 0x14b   :  { %324 = vsyncpa [#allocation4], 1 }

</bundles_post_ra>
